<compile_context>
chip_gen: v5e
topology: v5e:2x2
jax: 0.10.0
libtpu: 0.0.40
codegen_flags: <defaults>
</compile_context>

<pallas_src>
import jax
import jax.numpy as jnp
from jax import lax
from jax.experimental import pallas as pl
from jax.experimental.pallas import tpu as pltpu

BN_EPS = 1e-5
LANE = 128


def _round_up(n, m):
    return ((n + m - 1) // m) * m


def second_layer_kernel(x1_ref, x2_ref, x3_ref, a1_ref, a2_ref, a3_ref,
                        wt_ref, b_ref, gamma_ref, beta_ref,
                        b_out_ref, a_pack_ref, v_out_ref):
    bsz, kp = x1_ref.shape

    x1 = x1_ref[...]
    x2 = x2_ref[...]
    x3 = x3_ref[...]
    a1 = a1_ref[...]
    a2 = a2_ref[...]
    a3 = a3_ref[...]

    # Stack the three fusion pairs along the sublane (batch) axis so the MXU
    # sees M = 3B rows per weight push (2 matmuls total instead of 6):
    #   rows [0,B)   -> pair (x1, x2)
    #   rows [B,2B)  -> pair (x1, x3)
    #   rows [2B,3B) -> pair (x2, x3)
    xa = jnp.concatenate([x1, x1, x2], axis=0)     # (3B, KP) left halves
    xb = jnp.concatenate([x2, x3, x3], axis=0)     # (3B, KP) right halves

    wt1 = wt_ref[0:kp, :]                          # (KP, KP) left-half weights
    wt2 = wt_ref[kp:2 * kp, :]                     # (KP, KP) right-half weights

    # Shared Linear(2K -> K) on the concatenated features (f32 throughout).
    y = (jnp.dot(xa, wt1, preferred_element_type=jnp.float32)
         + jnp.dot(xb, wt2, preferred_element_type=jnp.float32)
         + b_ref[...])                             # (3B, KP), bias applied once

    # BatchNorm1d, training-mode stats (biased variance), per fusion pair.
    # Gamma/beta are applied once on the stacked tensor (no triplicated
    # broadcasts).
    # TODO(synk): nn.BatchNorm1d running-stats buffer updates not modeled.
    def _norm(yg):
        mu = jnp.mean(yg, axis=0, keepdims=True)
        var = jnp.mean((yg - mu) ** 2, axis=0, keepdims=True)
        return (yg - mu) * lax.rsqrt(var + BN_EPS)

    v = (gamma_ref[...]
         * jnp.concatenate([_norm(y[0:bsz]),
                            _norm(y[bsz:2 * bsz]),
                            _norm(y[2 * bsz:3 * bsz])], axis=0)
         + beta_ref[...])                          # (3B, KP)

    v12 = v[0:bsz]
    v13 = v[bsz:2 * bsz]
    v23 = v[2 * bsz:3 * bsz]

    # S_ij = <x_i, x_j>: a single cross-lane reduce over the stacked pairs.
    s = jnp.sum(xa * xb, axis=1, keepdims=True)    # (3B, 1)

    # Exact divisions (tiny (B,1) tensors): these ratios are sensitive to
    # cancellation, so no approximate reciprocal here.
    a12_hat = (a1 + a2) / (s[0:bsz] + 0.5)
    a13_hat = (a1 + a3) / (s[bsz:2 * bsz] + 0.5)
    a23_hat = (a2 + a3) / (s[2 * bsz:3 * bsz] + 0.5)

    a12 = a12_hat / (a13_hat + a23_hat)
    a13 = a13_hat / (a12_hat + a23_hat)
    a23 = a23_hat / (a12_hat + a13_hat)

    b_out_ref[...] = a12 * v12 + a13 * v13 + a23 * v23
    v_out_ref[...] = v

    # Pack a_12 / a_13 / a_23 into lanes 0/1/2 of one lane-dense (B, KP) tile
    # instead of three masked width-1 stores.
    lane = lax.broadcasted_iota(jnp.int32, (bsz, kp), 1)
    a_pack_ref[...] = (jnp.where(lane == 0, a12, 0.0)
                       + jnp.where(lane == 1, a13, 0.0)
                       + jnp.where(lane == 2, a23, 0.0))


def prepare_params(w, b, gamma, beta):
    """One-time parameter prep (outside the per-call hot path):
    transpose the torch-style (K, 2K) Linear weight and zero-pad everything
    to the 128-lane width.  Returns (wt_padded, bias, gamma, beta)."""
    w = jnp.asarray(w, jnp.float32)
    k = w.shape[0]
    kp = _round_up(k, LANE)

    wt = jnp.zeros((2 * kp, kp), jnp.float32)
    wt = wt.at[:k, :k].set(w[:, :k].T)            # weights hitting the left half
    wt = wt.at[kp:kp + k, :k].set(w[:, k:].T)     # weights hitting the right half

    def pad_row(v):
        v = jnp.asarray(v, jnp.float32).reshape(-1)
        return jnp.zeros((1, kp), jnp.float32).at[0, :k].set(v)

    return wt, pad_row(b), pad_row(gamma), pad_row(beta)


def second_layer(x1, x2, x3, a1, a2, a3, wt_p, b_p, gamma_p, beta_p, k):
    """SecondLayer forward.  x_i: (B, k), a_i: (B, 1); wt_p/b_p/gamma_p/beta_p
    come from prepare_params().  Returns (B, a_12, a_13, a_23, V_12, V_13, V_23)."""
    bsz = x1.shape[0]
    kp = b_p.shape[1]
    pad = ((0, 0), (0, kp - k))

    def pad_x(x):
        return jnp.pad(jnp.asarray(x, jnp.float32), pad)

    x1p, x2p, x3p = pad_x(x1), pad_x(x2), pad_x(x3)
    a1f = jnp.asarray(a1, jnp.float32)
    a2f = jnp.asarray(a2, jnp.float32)
    a3f = jnp.asarray(a3, jnp.float32)

    def vmem():
        return pl.BlockSpec(memory_space=pltpu.MemorySpace.VMEM)

    out_shape = (
        jax.ShapeDtypeStruct((bsz, kp), jnp.float32),       # B (lane-padded)
        jax.ShapeDtypeStruct((bsz, kp), jnp.float32),       # packed a_12/a_13/a_23
        jax.ShapeDtypeStruct((3 * bsz, kp), jnp.float32),   # stacked V_12/V_13/V_23
    )
    b_pad, a_pack, v_pad = pl.pallas_call(
        second_layer_kernel,
        out_shape=out_shape,
        in_specs=[vmem() for _ in range(10)],
        out_specs=(vmem(), vmem(), vmem()),
    )(x1p, x2p, x3p, a1f, a2f, a3f, wt_p, b_p, gamma_p, beta_p)

    B = b_pad[:, :k]
    a12 = a_pack[:, 0:1]
    a13 = a_pack[:, 1:2]
    a23 = a_pack[:, 2:3]
    v12 = v_pad[0:bsz, :k]
    v13 = v_pad[bsz:2 * bsz, :k]
    v23 = v_pad[2 * bsz:3 * bsz, :k]
    return B, a12, a13, a23, v12, v13, v23


def second_layer_ref(x1, x2, x3, a1, a2, a3, w, b, gamma, beta):
    """Pure-JAX reference matching the PyTorch forward (training-mode BN)."""
    def fuse(xa, xb):
        y = jnp.concatenate([xa, xb], axis=1) @ w.T + b
        mu = jnp.mean(y, axis=0, keepdims=True)
        var = jnp.mean((y - mu) ** 2, axis=0, keepdims=True)
        return gamma * (y - mu) / jnp.sqrt(var + BN_EPS) + beta

    v12, v13, v23 = fuse(x1, x2), fuse(x1, x3), fuse(x2, x3)
    s12 = jnp.sum(x1 * x2, axis=1, keepdims=True)
    s13 = jnp.sum(x1 * x3, axis=1, keepdims=True)
    s23 = jnp.sum(x2 * x3, axis=1, keepdims=True)
    a12h = (a1 + a2) / (s12 + 0.5)
    a13h = (a1 + a3) / (s13 + 0.5)
    a23h = (a2 + a3) / (s23 + 0.5)
    a12 = a12h / (a13h + a23h)
    a13 = a13h / (a12h + a23h)
    a23 = a23h / (a12h + a13h)
    B = a12 * v12 + a13 * v13 + a23 * v23
    return (B, a12, a13, a23, v12, v13, v23)


if __name__ == "__main__":
    K = 120       # module default k
    BATCH = 8

    key = jax.random.PRNGKey(0)
    kx1, kx2, kx3, ka1, ka2, ka3, kw, kb = jax.random.split(key, 8)

    x1 = jax.random.normal(kx1, (BATCH, K), jnp.float32)
    x2 = jax.random.normal(kx2, (BATCH, K), jnp.float32)
    x3 = jax.random.normal(kx3, (BATCH, K), jnp.float32)
    a1 = jax.random.uniform(ka1, (BATCH, 1), jnp.float32, 0.5, 1.5)
    a2 = jax.random.uniform(ka2, (BATCH, 1), jnp.float32, 0.5, 1.5)
    a3 = jax.random.uniform(ka3, (BATCH, 1), jnp.float32, 0.5, 1.5)

    # Shared fusion network parameters: Linear(2K -> K) + BatchNorm1d(K).
    w = jax.random.normal(kw, (K, 2 * K), jnp.float32) * 0.05
    b = jax.random.normal(kb, (K,), jnp.float32) * 0.05
    gamma = jnp.ones((K,), jnp.float32)
    beta = jnp.zeros((K,), jnp.float32)

    # Pre-transpose / pad parameters once (outside the per-call path).
    params = prepare_params(w, b, gamma, beta)

    outs = second_layer(x1, x2, x3, a1, a2, a3, *params, K)
    outs = jax.block_until_ready(outs)

    refs = second_layer_ref(x1, x2, x3, a1, a2, a3, w, b, gamma, beta)
    for o, r in zip(outs, refs):
        assert o.shape == r.shape, (o.shape, r.shape)
        assert bool(jnp.all(jnp.isfinite(o)))
        assert bool(jnp.allclose(o, r, rtol=2e-2, atol=2e-2)), (
            float(jnp.max(jnp.abs(o - r))))

    print("KERNEL_OK")
</pallas_src>

<mosaic_0001>
module attributes {stable_mosaic.version = 11 : i64} {
  func.func @second_layer_kernel(%arg0: memref<8x128xf32, #tpu.memory_space<vmem>>, %arg1: memref<8x128xf32, #tpu.memory_space<vmem>>, %arg2: memref<8x128xf32, #tpu.memory_space<vmem>>, %arg3: memref<8x1xf32, #tpu.memory_space<vmem>>, %arg4: memref<8x1xf32, #tpu.memory_space<vmem>>, %arg5: memref<8x1xf32, #tpu.memory_space<vmem>>, %arg6: memref<256x128xf32, #tpu.memory_space<vmem>>, %arg7: memref<1x128xf32, #tpu.memory_space<vmem>>, %arg8: memref<1x128xf32, #tpu.memory_space<vmem>>, %arg9: memref<1x128xf32, #tpu.memory_space<vmem>>, %arg10: memref<8x128xf32, #tpu.memory_space<vmem>>, %arg11: memref<8x128xf32, #tpu.memory_space<vmem>>, %arg12: memref<24x128xf32, #tpu.memory_space<vmem>>) attributes {dimension_semantics = [], scalar_prefetch = 0 : i64, scratch_operands = 0 : i64, tpu.core_type = #tpu.core_type<tc>} {
    %c0 = arith.constant 0 : index
    %c0_0 = arith.constant 0 : index
    %0 = vector.load %arg0[%c0, %c0_0] : memref<8x128xf32, #tpu.memory_space<vmem>>, vector<8x128xf32>
    %c0_1 = arith.constant 0 : index
    %c0_2 = arith.constant 0 : index
    %1 = vector.load %arg1[%c0_1, %c0_2] : memref<8x128xf32, #tpu.memory_space<vmem>>, vector<8x128xf32>
    %c0_3 = arith.constant 0 : index
    %c0_4 = arith.constant 0 : index
    %2 = vector.load %arg2[%c0_3, %c0_4] : memref<8x128xf32, #tpu.memory_space<vmem>>, vector<8x128xf32>
    %c0_5 = arith.constant 0 : index
    %c0_6 = arith.constant 0 : index
    %3 = vector.load %arg3[%c0_5, %c0_6] : memref<8x1xf32, #tpu.memory_space<vmem>>, vector<8x1xf32>
    %c0_7 = arith.constant 0 : index
    %c0_8 = arith.constant 0 : index
    %4 = vector.load %arg4[%c0_7, %c0_8] : memref<8x1xf32, #tpu.memory_space<vmem>>, vector<8x1xf32>
    %c0_9 = arith.constant 0 : index
    %c0_10 = arith.constant 0 : index
    %5 = vector.load %arg5[%c0_9, %c0_10] : memref<8x1xf32, #tpu.memory_space<vmem>>, vector<8x1xf32>
    %6 = tpu.concatenate %0, %0, %1 in 0 : vector<8x128xf32>, vector<8x128xf32>, vector<8x128xf32> -> vector<24x128xf32>
    %7 = tpu.concatenate %1, %2, %2 in 0 : vector<8x128xf32>, vector<8x128xf32>, vector<8x128xf32> -> vector<24x128xf32>
    %c0_11 = arith.constant 0 : index
    %c0_12 = arith.constant 0 : index
    %8 = vector.load %arg6[%c0_11, %c0_12] : memref<256x128xf32, #tpu.memory_space<vmem>>, vector<128x128xf32>
    %c128 = arith.constant 128 : index
    %c0_13 = arith.constant 0 : index
    %9 = vector.load %arg6[%c128, %c0_13] : memref<256x128xf32, #tpu.memory_space<vmem>>, vector<128x128xf32>
    %cst = arith.constant dense<0.000000e+00> : vector<24x128xf32>
    %10 = tpu.matmul %6, %8, %cst {dimension_numbers = #tpu.dot_dimension_numbers<[1], [0], [0], [1], [0, 0, 1, 1], [], []>} : vector<24x128xf32>, vector<128x128xf32>, vector<24x128xf32> -> vector<24x128xf32>
    %cst_14 = arith.constant dense<0.000000e+00> : vector<24x128xf32>
    %11 = tpu.matmul %7, %9, %cst_14 {dimension_numbers = #tpu.dot_dimension_numbers<[1], [0], [0], [1], [0, 0, 1, 1], [], []>} : vector<24x128xf32>, vector<128x128xf32>, vector<24x128xf32> -> vector<24x128xf32>
    %12 = arith.addf %10, %11 : vector<24x128xf32>
    %c0_15 = arith.constant 0 : index
    %c0_16 = arith.constant 0 : index
    %13 = vector.load %arg7[%c0_15, %c0_16] : memref<1x128xf32, #tpu.memory_space<vmem>>, vector<1x128xf32>
    %14 = vector.broadcast %13 : vector<1x128xf32> to vector<24x128xf32>
    %15 = arith.addf %12, %14 : vector<24x128xf32>
    %c0_17 = arith.constant 0 : index
    %c0_18 = arith.constant 0 : index
    %16 = vector.load %arg8[%c0_17, %c0_18] : memref<1x128xf32, #tpu.memory_space<vmem>>, vector<1x128xf32>
    %17 = vector.extract_strided_slice %15 {offsets = [0, 0], sizes = [8, 128], strides = [1, 1]} : vector<24x128xf32> to vector<8x128xf32>
    %cst_19 = arith.constant dense<0.000000e+00> : vector<128xf32>
    %18 = vector.multi_reduction <add>, %17, %cst_19 [0] : vector<8x128xf32> to vector<128xf32>
    %19 = vector.shape_cast %18 : vector<128xf32> to vector<1x128xf32>
    %cst_20 = arith.constant 8.000000e+00 : f32
    %20 = vector.broadcast %cst_20 : f32 to vector<1x128xf32>
    %21 = arith.divf %19, %20 : vector<1x128xf32>
    %22 = vector.broadcast %21 : vector<1x128xf32> to vector<8x128xf32>
    %23 = arith.subf %17, %22 : vector<8x128xf32>
    %24 = arith.mulf %23, %23 : vector<8x128xf32>
    %cst_21 = arith.constant dense<0.000000e+00> : vector<128xf32>
    %25 = vector.multi_reduction <add>, %24, %cst_21 [0] : vector<8x128xf32> to vector<128xf32>
    %26 = vector.shape_cast %25 : vector<128xf32> to vector<1x128xf32>
    %cst_22 = arith.constant 8.000000e+00 : f32
    %27 = vector.broadcast %cst_22 : f32 to vector<1x128xf32>
    %28 = arith.divf %26, %27 : vector<1x128xf32>
    %29 = vector.broadcast %21 : vector<1x128xf32> to vector<8x128xf32>
    %30 = arith.subf %17, %29 : vector<8x128xf32>
    %cst_23 = arith.constant 9.99999974E-6 : f32
    %31 = vector.broadcast %cst_23 : f32 to vector<1x128xf32>
    %32 = arith.addf %28, %31 : vector<1x128xf32>
    %33 = math.rsqrt %32 : vector<1x128xf32>
    %34 = vector.broadcast %33 : vector<1x128xf32> to vector<8x128xf32>
    %35 = arith.mulf %30, %34 : vector<8x128xf32>
    %36 = vector.extract_strided_slice %15 {offsets = [8, 0], sizes = [8, 128], strides = [1, 1]} : vector<24x128xf32> to vector<8x128xf32>
    %cst_24 = arith.constant dense<0.000000e+00> : vector<128xf32>
    %37 = vector.multi_reduction <add>, %36, %cst_24 [0] : vector<8x128xf32> to vector<128xf32>
    %38 = vector.shape_cast %37 : vector<128xf32> to vector<1x128xf32>
    %cst_25 = arith.constant 8.000000e+00 : f32
    %39 = vector.broadcast %cst_25 : f32 to vector<1x128xf32>
    %40 = arith.divf %38, %39 : vector<1x128xf32>
    %41 = vector.broadcast %40 : vector<1x128xf32> to vector<8x128xf32>
    %42 = arith.subf %36, %41 : vector<8x128xf32>
    %43 = arith.mulf %42, %42 : vector<8x128xf32>
    %cst_26 = arith.constant dense<0.000000e+00> : vector<128xf32>
    %44 = vector.multi_reduction <add>, %43, %cst_26 [0] : vector<8x128xf32> to vector<128xf32>
    %45 = vector.shape_cast %44 : vector<128xf32> to vector<1x128xf32>
    %cst_27 = arith.constant 8.000000e+00 : f32
    %46 = vector.broadcast %cst_27 : f32 to vector<1x128xf32>
    %47 = arith.divf %45, %46 : vector<1x128xf32>
    %48 = vector.broadcast %40 : vector<1x128xf32> to vector<8x128xf32>
    %49 = arith.subf %36, %48 : vector<8x128xf32>
    %cst_28 = arith.constant 9.99999974E-6 : f32
    %50 = vector.broadcast %cst_28 : f32 to vector<1x128xf32>
    %51 = arith.addf %47, %50 : vector<1x128xf32>
    %52 = math.rsqrt %51 : vector<1x128xf32>
    %53 = vector.broadcast %52 : vector<1x128xf32> to vector<8x128xf32>
    %54 = arith.mulf %49, %53 : vector<8x128xf32>
    %55 = vector.extract_strided_slice %15 {offsets = [16, 0], sizes = [8, 128], strides = [1, 1]} : vector<24x128xf32> to vector<8x128xf32>
    %cst_29 = arith.constant dense<0.000000e+00> : vector<128xf32>
    %56 = vector.multi_reduction <add>, %55, %cst_29 [0] : vector<8x128xf32> to vector<128xf32>
    %57 = vector.shape_cast %56 : vector<128xf32> to vector<1x128xf32>
    %cst_30 = arith.constant 8.000000e+00 : f32
    %58 = vector.broadcast %cst_30 : f32 to vector<1x128xf32>
    %59 = arith.divf %57, %58 : vector<1x128xf32>
    %60 = vector.broadcast %59 : vector<1x128xf32> to vector<8x128xf32>
    %61 = arith.subf %55, %60 : vector<8x128xf32>
    %62 = arith.mulf %61, %61 : vector<8x128xf32>
    %cst_31 = arith.constant dense<0.000000e+00> : vector<128xf32>
    %63 = vector.multi_reduction <add>, %62, %cst_31 [0] : vector<8x128xf32> to vector<128xf32>
    %64 = vector.shape_cast %63 : vector<128xf32> to vector<1x128xf32>
    %cst_32 = arith.constant 8.000000e+00 : f32
    %65 = vector.broadcast %cst_32 : f32 to vector<1x128xf32>
    %66 = arith.divf %64, %65 : vector<1x128xf32>
    %67 = vector.broadcast %59 : vector<1x128xf32> to vector<8x128xf32>
    %68 = arith.subf %55, %67 : vector<8x128xf32>
    %cst_33 = arith.constant 9.99999974E-6 : f32
    %69 = vector.broadcast %cst_33 : f32 to vector<1x128xf32>
    %70 = arith.addf %66, %69 : vector<1x128xf32>
    %71 = math.rsqrt %70 : vector<1x128xf32>
    %72 = vector.broadcast %71 : vector<1x128xf32> to vector<8x128xf32>
    %73 = arith.mulf %68, %72 : vector<8x128xf32>
    %74 = tpu.concatenate %35, %54, %73 in 0 : vector<8x128xf32>, vector<8x128xf32>, vector<8x128xf32> -> vector<24x128xf32>
    %75 = vector.broadcast %16 : vector<1x128xf32> to vector<24x128xf32>
    %76 = arith.mulf %75, %74 : vector<24x128xf32>
    %c0_34 = arith.constant 0 : index
    %c0_35 = arith.constant 0 : index
    %77 = vector.load %arg9[%c0_34, %c0_35] : memref<1x128xf32, #tpu.memory_space<vmem>>, vector<1x128xf32>
    %78 = vector.broadcast %77 : vector<1x128xf32> to vector<24x128xf32>
    %79 = arith.addf %76, %78 : vector<24x128xf32>
    %80 = vector.extract_strided_slice %79 {offsets = [0, 0], sizes = [8, 128], strides = [1, 1]} : vector<24x128xf32> to vector<8x128xf32>
    %81 = vector.extract_strided_slice %79 {offsets = [8, 0], sizes = [8, 128], strides = [1, 1]} : vector<24x128xf32> to vector<8x128xf32>
    %82 = vector.extract_strided_slice %79 {offsets = [16, 0], sizes = [8, 128], strides = [1, 1]} : vector<24x128xf32> to vector<8x128xf32>
    %83 = arith.mulf %6, %7 : vector<24x128xf32>
    %cst_36 = arith.constant dense<0.000000e+00> : vector<24xf32>
    %84 = vector.multi_reduction <add>, %83, %cst_36 [1] : vector<24x128xf32> to vector<24xf32>
    %85 = vector.shape_cast %84 : vector<24xf32> to vector<24x1xf32>
    %86 = arith.addf %3, %4 : vector<8x1xf32>
    %87 = vector.extract_strided_slice %85 {offsets = [0, 0], sizes = [8, 1], strides = [1, 1]} : vector<24x1xf32> to vector<8x1xf32>
    %cst_37 = arith.constant 5.000000e-01 : f32
    %88 = vector.broadcast %cst_37 : f32 to vector<8x1xf32>
    %89 = arith.addf %87, %88 : vector<8x1xf32>
    %90 = arith.divf %86, %89 : vector<8x1xf32>
    %91 = arith.addf %3, %5 : vector<8x1xf32>
    %92 = vector.extract_strided_slice %85 {offsets = [8, 0], sizes = [8, 1], strides = [1, 1]} : vector<24x1xf32> to vector<8x1xf32>
    %cst_38 = arith.constant 5.000000e-01 : f32
    %93 = vector.broadcast %cst_38 : f32 to vector<8x1xf32>
    %94 = arith.addf %92, %93 : vector<8x1xf32>
    %95 = arith.divf %91, %94 : vector<8x1xf32>
    %96 = arith.addf %4, %5 : vector<8x1xf32>
    %97 = vector.extract_strided_slice %85 {offsets = [16, 0], sizes = [8, 1], strides = [1, 1]} : vector<24x1xf32> to vector<8x1xf32>
    %cst_39 = arith.constant 5.000000e-01 : f32
    %98 = vector.broadcast %cst_39 : f32 to vector<8x1xf32>
    %99 = arith.addf %97, %98 : vector<8x1xf32>
    %100 = arith.divf %96, %99 : vector<8x1xf32>
    %101 = arith.addf %95, %100 : vector<8x1xf32>
    %102 = arith.divf %90, %101 : vector<8x1xf32>
    %103 = arith.addf %90, %100 : vector<8x1xf32>
    %104 = arith.divf %95, %103 : vector<8x1xf32>
    %105 = arith.addf %90, %95 : vector<8x1xf32>
    %106 = arith.divf %100, %105 : vector<8x1xf32>
    %107 = vector.broadcast %102 : vector<8x1xf32> to vector<8x128xf32>
    %108 = arith.mulf %107, %80 : vector<8x128xf32>
    %109 = vector.broadcast %104 : vector<8x1xf32> to vector<8x128xf32>
    %110 = arith.mulf %109, %81 : vector<8x128xf32>
    %111 = arith.addf %108, %110 : vector<8x128xf32>
    %112 = vector.broadcast %106 : vector<8x1xf32> to vector<8x128xf32>
    %113 = arith.mulf %112, %82 : vector<8x128xf32>
    %114 = arith.addf %111, %113 : vector<8x128xf32>
    %c0_40 = arith.constant 0 : index
    %c0_41 = arith.constant 0 : index
    %115 = vector.load %arg10[%c0_40, %c0_41] : memref<8x128xf32, #tpu.memory_space<vmem>>, vector<8x128xf32>
    tpu.vector_store %arg10[%c0_40, %c0_41], %114 {strides = array<i32>} : memref<8x128xf32, #tpu.memory_space<vmem>>, vector<8x128xf32>,
    %c0_42 = arith.constant 0 : index
    %c0_43 = arith.constant 0 : index
    %116 = vector.load %arg12[%c0_42, %c0_43] : memref<24x128xf32, #tpu.memory_space<vmem>>, vector<24x128xf32>
    tpu.vector_store %arg12[%c0_42, %c0_43], %79 {strides = array<i32>} : memref<24x128xf32, #tpu.memory_space<vmem>>, vector<24x128xf32>,
    %117 = tpu.iota {dimensions = array<i32: 1>} : vector<8x128xi32>
    %c0_i32 = arith.constant 0 : i32
    %118 = vector.broadcast %c0_i32 : i32 to vector<8x128xi32>
    %119 = arith.cmpi eq, %117, %118 : vector<8x128xi32>
    %cst_44 = arith.constant 0.000000e+00 : f32
    %120 = vector.shape_cast %102 : vector<8x1xf32> to vector<8x1xf32>
    %121 = vector.broadcast %120 : vector<8x1xf32> to vector<8x128xf32>
    %122 = vector.broadcast %cst_44 : f32 to vector<8x128xf32>
    %123 = arith.select %119, %121, %122 : vector<8x128xi1>, vector<8x128xf32>
    %c1_i32 = arith.constant 1 : i32
    %124 = vector.broadcast %c1_i32 : i32 to vector<8x128xi32>
    %125 = arith.cmpi eq, %117, %124 : vector<8x128xi32>
    %cst_45 = arith.constant 0.000000e+00 : f32
    %126 = vector.shape_cast %104 : vector<8x1xf32> to vector<8x1xf32>
    %127 = vector.broadcast %126 : vector<8x1xf32> to vector<8x128xf32>
    %128 = vector.broadcast %cst_45 : f32 to vector<8x128xf32>
    %129 = arith.select %125, %127, %128 : vector<8x128xi1>, vector<8x128xf32>
    %130 = arith.addf %123, %129 : vector<8x128xf32>
    %c2_i32 = arith.constant 2 : i32
    %131 = vector.broadcast %c2_i32 : i32 to vector<8x128xi32>
    %132 = arith.cmpi eq, %117, %131 : vector<8x128xi32>
    %cst_46 = arith.constant 0.000000e+00 : f32
    %133 = vector.shape_cast %106 : vector<8x1xf32> to vector<8x1xf32>
    %134 = vector.broadcast %133 : vector<8x1xf32> to vector<8x128xf32>
    %135 = vector.broadcast %cst_46 : f32 to vector<8x128xf32>
    %136 = arith.select %132, %134, %135 : vector<8x128xi1>, vector<8x128xf32>
    %137 = arith.addf %130, %136 : vector<8x128xf32>
    %c0_47 = arith.constant 0 : index
    %c0_48 = arith.constant 0 : index
    %138 = vector.load %arg11[%c0_47, %c0_48] : memref<8x128xf32, #tpu.memory_space<vmem>>, vector<8x128xf32>
    tpu.vector_store %arg11[%c0_47, %c0_48], %137 {strides = array<i32>} : memref<8x128xf32, #tpu.memory_space<vmem>>, vector<8x128xf32>,
    return
  }
}

</mosaic_0001>

<bundles_post_ra>
// kernel: tpu_custom_call.1
= control target key start
LH: loop header
LB: loop body
LE: loop exit
PB: predicated region body
PF: predicated region fallthrough
CT: control target
= control target key end

     0   :  { %18 = vsyncpa [#allocation3], 0  ;;  %s785_s0 = inlined_call_operand.vmem [shape: f32[8,128], index: 0, kind: input, shape index: {}]   ;;  %s786_s1 = inlined_call_operand.vmem [shape: f32[8,128], index: 1, kind: input, shape index: {}]   ;;  %s787_s2 = inlined_call_operand.vmem [shape: f32[8,128], index: 2, kind: input, shape index: {}]   ;;  %s788_s3 = inlined_call_operand.vmem [shape: f32[8,1], index: 3, kind: input, shape index: {}]   ;;  %s789_s4 = inlined_call_operand.vmem [shape: f32[8,1], index: 4, kind: input, shape index: {}]   ;;  %s790_s5 = inlined_call_operand.vmem [shape: f32[8,1], index: 5, kind: input, shape index: {}]   ;;  %s791_s6 = inlined_call_operand.hbm [shape: f32[256,128], index: 6, kind: input, shape index: {}]   ;;  %s792_s7 = inlined_call_operand.vmem [shape: f32[1,128], index: 7, kind: input, shape index: {}]   ;;  %s793_s8 = inlined_call_operand.vmem [shape: f32[1,128], index: 8, kind: input, shape index: {}]   ;;  %s794_s9 = inlined_call_operand.vmem [shape: f32[1,128], index: 9, kind: input, shape index: {}]   ;;  %s795_s10 = inlined_call_operand.hbm [shape: f32[8,128], index: 10, kind: output, shape index: {0}]   ;;  %s796_s11 = inlined_call_operand.hbm [shape: f32[8,128], index: 11, kind: output, shape index: {1}]   ;;  %s797_s12 = inlined_call_operand.hbm [shape: f32[24,128], index: 12, kind: output, shape index: {2}]  }
   0x1   :  { %19 = vsyncpa [#allocation4], 0 }
   0x2   :  { %20 = vsyncpa [#allocation7], 0  ;;  %s37_s23 = sshll.u32 %s791_s6, 4  ;;  %s619_s24 = smov [#allocation2]   ;;  %s38_s23 = int_to_ptr.hbm [resolvable:$true] %s37_s23 }
   0x3   :  { %s39_s25 = sshll.u32 %s619_s24, 4  ;;  %s620_s26 = smov 128   ;;  %s40_s25 = int_to_ptr.vmem [resolvable:$true] %s39_s25 }
   0x4   :  { %s621_s27 = smov 8  }
   0x5   :  { %45 = dma.hbm_to_vmem [thread:$0]  %s38_s23, 4096, %s40_s25, [#allocation3], %s620_s26, %s620_s26, %s621_s27  }
   0x6   :  { %613 = dma.done.wait [#allocation3], 4096  }
   0x7   :  { %614 = vsyncadd [#allocation3], 4294963200  ;;  %v93_v0 = vld [vmem:[#allocation2 + $0xf8] sm:$0xff]  ;;  %v701_v2 = vld [vmem:[%s786_s1] sm:$0xff]  ;;  %v622_v38 = vmov 0   ;;  %s419_s22 = sshll.u32 %s796_s11, 4  ;;  %s420_s22 = int_to_ptr.hbm [resolvable:$true] %s419_s22 }
   0x8   :  { %v77_v1 = vld [vmem:[#allocation2 + $0x78] sm:$0xff]  ;;  %451 = vmatpush.msra.mxu2 %v93_v0  ;;  %v706_v3 = vld [vmem:[%s787_s2] sm:$0xff]  ;;  %v92_v5 = vld [vmem:[#allocation2 + $0xf0] sm:$0xff]  ;;  %94 = vmatpush.msra.mxu0 %v93_v0  ;;  %s625_s23 = smov [#allocation5]   ;;  %s408_s29 = sshll.u32 %s795_s10, 4  ;;  %s409_s29 = int_to_ptr.hbm [resolvable:$true] %s408_s29 }
   0x9   :  { %467 = vmatpush.msra.mxu3 %v77_v1  ;;  %v711_v4 = vld [vmem:[%s785_s0] sm:$0xff]  ;;  %v260_v6 = vmul.f32 %v706_v3, %v701_v2  ;;  %v76_v8 = vld [vmem:[#allocation2 + $0x70] sm:$0xff]  ;;  %v91_v9 = vld [vmem:[#allocation2 + $0xe8] sm:$0xff]  ;;  %120 = vmatpush.msra.mxu1 %v77_v1  ;;  %s406_s24 = sshll.u32 %s625_s23, 4  ;;  %s626_s6 = smov [#allocation8]   ;;  %s407_s24 = int_to_ptr.vmem [resolvable:$true] %s406_s24 }
   0xa   :  { %v258_v7 = vmul.f32 %v701_v2, %v711_v4  ;;  %v75_v10 = vld [vmem:[#allocation2 + $0x68] sm:$0xff]  ;;  %452 = vmatpush.msra.mxu2 %v92_v5  ;;  %v90_v11 = vld [vmem:[#allocation2 + $0xe0] sm:$0xff]  ;;  %v89_v13 = vld [vmem:[#allocation2 + $0xd8] sm:$0xff]  ;;  %95 = vmatpush.msra.mxu0 %v92_v5  ;;  %v259_v15 = vmul.f32 %v706_v3, %v711_v4  ;;  %s427_s30 = sshll.u32 %s626_s6, 4  ;;  %s429_s0 = sshll.u32 %s797_s12, 4  ;;  %s428_s30 = int_to_ptr.vmem [resolvable:$true] %s427_s30  ;;  %s430_s0 = int_to_ptr.hbm [resolvable:$true] %s429_s0 }
   0xb   :  { %468 = vmatpush.msra.mxu3 %v76_v8  ;;  %265 = vadd.xlane.f32.xlu1 %v260_v6  ;;  %v74_v12 = vld [vmem:[#allocation2 + $0x60] sm:$0xff]  ;;  %v73_v14 = vld [vmem:[#allocation2 + $0x58] sm:$0xff]  ;;  %v88_v16 = vld [vmem:[#allocation2 + $0xd0] sm:$0xff] }
   0xc   :  { %261 = vadd.xlane.f32.xlu0 %v258_v7  ;;  %453 = vmatpush.msra.mxu2 %v91_v9  ;;  %v72_v17 = vld [vmem:[#allocation2 + $0x50] sm:$0xff]  ;;  %v87_v18 = vld [vmem:[#allocation2 + $0xc8] sm:$0xff]  ;;  %v86_v20 = vld [vmem:[#allocation2 + $0xc0] sm:$0xff] }
   0xd   :  { %469 = vmatpush.msra.mxu3 %v75_v10  ;;  %121 = vmatpush.msra.mxu1 %v76_v8  ;;  %v71_v19 = vld [vmem:[#allocation2 + $0x48] sm:$0xff]  ;;  %v70_v21 = vld [vmem:[#allocation2 + $0x40] sm:$0xff]  ;;  %v85_v22 = vld [vmem:[#allocation2 + $0xb8] sm:$0xff] }
   0xe   :  { %454 = vmatpush.msra.mxu2 %v90_v11  ;;  %96 = vmatpush.msra.mxu0 %v91_v9  ;;  %v69_v23 = vld [vmem:[#allocation2 + $0x38] sm:$0xff]  ;;  %v84_v24 = vld [vmem:[#allocation2 + $0xb0] sm:$0xff]  ;;  %v83_v26 = vld [vmem:[#allocation2 + $0xa8] sm:$0xff] }
   0xf   :  { %470 = vmatpush.msra.mxu3 %v74_v12  ;;  %122 = vmatpush.msra.mxu1 %v75_v10  ;;  %v68_v25 = vld [vmem:[#allocation2 + $0x30] sm:$0xff]  ;;  %v67_v27 = vld [vmem:[#allocation2 + $0x28] sm:$0xff]  ;;  %v82_v28 = vld [vmem:[#allocation2 + $0xa0] sm:$0xff] }
  0x10   :  { %455 = vmatpush.msra.mxu2 %v89_v13  ;;  %97 = vmatpush.msra.mxu0 %v90_v11  ;;  %v66_v29 = vld [vmem:[#allocation2 + $0x20] sm:$0xff]  ;;  %v81_v30 = vld [vmem:[#allocation2 + $0x98] sm:$0xff]  ;;  %v80_v32 = vld [vmem:[#allocation2 + $0x90] sm:$0xff] }
  0x11   :  { %471 = vmatpush.msra.mxu3 %v73_v14  ;;  %123 = vmatpush.msra.mxu1 %v74_v12  ;;  %v65_v31 = vld [vmem:[#allocation2 + $0x18] sm:$0xff]  ;;  %v64_v33 = vld [vmem:[#allocation2 + $0x10] sm:$0xff]  ;;  %v79_v34 = vld [vmem:[#allocation2 + $0x88] sm:$0xff] }
  0x12   :  { %456 = vmatpush.msra.mxu2 %v88_v16  ;;  %98 = vmatpush.msra.mxu0 %v89_v13  ;;  %v63_v35 = vld [vmem:[#allocation2 + $0x8] sm:$0xff]  ;;  %v78_v36 = vld [vmem:[#allocation2 + $0x80] sm:$0xff] }
  0x13   :  { %472 = vmatpush.msra.mxu3 %v72_v17  ;;  %124 = vmatpush.msra.mxu1 %v73_v14  ;;  %v62_v37 = vld [vmem:[#allocation2] sm:$0xff] }
  0x14   :  { %263 = vadd.xlane.f32.xlu0 %v259_v15  ;;  %457 = vmatpush.msra.mxu2 %v87_v18  ;;  %v60_v52 = vld [vmem:[%s789_s4] sm:$0xff] }
  0x15   :  { %473 = vmatpush.msra.mxu3 %v71_v19  ;;  %99 = vmatpush.msra.mxu0 %v88_v16  ;;  %v61_v53 = vld [vmem:[%s790_s5] sm:$0xff] }
  0x16   :  { %458 = vmatpush.msra.mxu2 %v86_v20  ;;  %125 = vmatpush.msra.mxu1 %v72_v17  ;;  %v59_v57 = vld [vmem:[%s788_s3] sm:$0xff]  ;;  %v301_v61 = vadd.f32 %v61_v53, %v60_v52 }
  0x17   :  { %474 = vmatpush.msra.mxu3 %v70_v21  ;;  %100 = vmatpush.msra.mxu0 %v87_v18  ;;  %v267_v1 = vadd.f32 %v60_v52, %v59_v57  ;;  %v284_v15 = vadd.f32 %v61_v53, %v59_v57 }
  0x18   :  { %459 = vmatpush.msra.mxu2 %v85_v22  ;;  %126 = vmatpush.msra.mxu1 %v71_v19 }
  0x19   :  { %475 = vmatpush.msra.mxu3 %v69_v23  ;;  %101 = vmatpush.msra.mxu0 %v86_v20 }
  0x1a   :  { %460 = vmatpush.msra.mxu2 %v84_v24  ;;  %127 = vmatpush.msra.mxu1 %v70_v21 }
  0x1b   :  { %476 = vmatpush.msra.mxu3 %v68_v25  ;;  %102 = vmatpush.msra.mxu0 %v85_v22 }
  0x1c   :  { %461 = vmatpush.msra.mxu2 %v83_v26  ;;  %128 = vmatpush.msra.mxu1 %v69_v23 }
  0x1d   :  { %477 = vmatpush.msra.mxu3 %v67_v27  ;;  %103 = vmatpush.msra.mxu0 %v84_v24  ;;  %v623_v24 = vmov 8.0  }
  0x1e   :  { %462 = vmatpush.msra.mxu2 %v82_v28  ;;  %129 = vmatpush.msra.mxu1 %v68_v25 }
  0x1f   :  { %478 = vmatpush.msra.mxu3 %v66_v29  ;;  %104 = vmatpush.msra.mxu0 %v83_v26 }
  0x20   :  { %463 = vmatpush.msra.mxu2 %v81_v30  ;;  %130 = vmatpush.msra.mxu1 %v67_v27 }
  0x21   :  { %479 = vmatpush.msra.mxu3 %v65_v31  ;;  %105 = vmatpush.msra.mxu0 %v82_v28 }
  0x22   :  { %464 = vmatpush.msra.mxu2 %v80_v32  ;;  %131 = vmatpush.msra.mxu1 %v66_v29 }
  0x23   :  { %480 = vmatpush.msra.mxu3 %v64_v33  ;;  %106 = vmatpush.msra.mxu0 %v81_v30 }
  0x24   :  { %465 = vmatpush.msra.mxu2 %v79_v34  ;;  %132 = vmatpush.msra.mxu1 %v65_v31 }
  0x25   :  { %481 = vmatpush.msra.mxu3 %v63_v35  ;;  %107 = vmatpush.msra.mxu0 %v80_v32 }
  0x26   :  { %466 = vmatpush.msra.mxu2 %v78_v36  ;;  %133 = vmatpush.msra.mxu1 %v64_v33 }
  0x27   :  { %482 = vmatpush.msra.mxu3 %v62_v37  ;;  %113 = vmatmul.f32.vlgmr.msra.gmra.mxu2 %v706_v3 }
  0x28   :  { %139 = vmatmul.f32.vlgmr.msra.gmra.mxu3 %v711_v4  ;;  %108 = vmatpush.msra.mxu0 %v79_v34 }
  0x29   :  { %134 = vmatpush.msra.mxu1 %v63_v35  ;;  %492 = vset.pattern.permute.xlu2 %v622_v38 }
  0x2a   :  { %109 = vmatpush.msra.mxu0 %v78_v36  ;;  %491 = vset.pattern.permute.xlu1 %v622_v38 }
  0x2b   :  { %110 = vmatmul.f32.vlgmr.msra.gmra.mxu0 %v701_v2  ;;  %135 = vmatpush.msra.mxu1 %v62_v37 }
  0x2c   :  { %136 = vmatmul.f32.vlgmr.msra.gmra.mxu1 %v711_v4  ;;  %493 = vset.pattern.permute.xlu0 %v622_v38 }
  0x2f   :  { %116 = vmatmul.f32.gmra.mxu2 %v706_v3 }
  0x30   :  { %142 = vmatmul.f32.gmra.mxu3 %v701_v2 }
  0x7e   :  { %v266_v39 = vpop.xlane.xlu1 %265 }
  0x7f   :  { %v262_v40 = vpop.xlane.xlu0 %261  ;;  %v302_v41 = vadd.f32 0.5, %v266_v39 }
  0x80   :  { %v268_v42 = vadd.f32 0.5, %v262_v40 }
  0x81   :  { %497 = vrcp.f32 %v302_v41  ;;  %vm308_vm0 = vweird.f32 %v302_v41  ;;  %v314_v50 = vand.u32 2147483648, %v302_v41  ;;  %v312_v55 = vand.u32 2147483647, %v302_v41 }
  0x82   :  { %499 = vrcp.f32 %v268_v42  ;;  %v280_v56 = vand.u32 2147483648, %v268_v42  ;;  %v278_v59 = vand.u32 2147483647, %v268_v42  ;;  %vm274_vm4 = vweird.f32 %v268_v42 }
  0x83   :  { %v315_v63 = vor.u32 1.1754944e-38, %v314_v50  ;;  %vm313_vm5 = vcmp.eq.f32.partialorder %v312_v55, 8.507059e+37 }
  0x84   :  { %v281_v2 = vor.u32 1.1754944e-38, %v280_v56  ;;  %vm279_vm7 = vcmp.eq.f32.partialorder %v278_v59, 8.507059e+37 }
  0x87   :  { %v264_v43 = vpop.xlane.xlu0 %263  ;;  %v498_v44 = vpop.eup %497 }
  0x88   :  { %v285_v45 = vadd.f32 0.5, %v264_v43  ;;  %v500_v46 = vpop.eup %499  ;;  %v304_v47 = vmul.f32 %v498_v44, %v302_v41  ;;  %vm309_vm1 = vweird.f32 %v498_v44 }
  0x89   :  { %v270_v48 = vmul.f32 %v500_v46, %v268_v42  ;;  %vm275_vm2 = vweird.f32 %v500_v46  ;;  %vm310_vm3 = vmor %vm308_vm0, %vm309_vm1 }
  0x8a   :  { %501 = vrcp.f32 %v285_v45  ;;  %v305_v49 = vsub.f32 1.0, %v304_v47  ;;  %vm276_vm6 = vmor %vm274_vm4, %vm275_vm2  ;;  %v297_v11 = vand.u32 2147483648, %v285_v45  ;;  %v295_v13 = vand.u32 2147483647, %v285_v45 }
  0x8b   :  { %v271_v51 = vsub.f32 1.0, %v270_v48  ;;  %vm291_vm9 = vweird.f32 %v285_v45 }
  0x8c   :  { %v306_v54 = vmul.f32 %v498_v44, %v305_v49  ;;  %v298_v17 = vor.u32 1.1754944e-38, %v297_v11  ;;  %vm296_vm11 = vcmp.eq.f32.partialorder %v295_v13, 8.507059e+37 }
  0x8d   :  { %v272_v58 = vmul.f32 %v500_v46, %v271_v51 }
  0x8e   :  { %v307_v60 = vadd.f32 %v498_v44, %v306_v54 }
  0x8f   :  { %v273_v0 = vadd.f32 %v500_v46, %v272_v58 }
  0x90   :  { %v502_v62 = vpop.eup %501  ;;  %v311_v4 = vsel %vm310_vm3, %v498_v44, %v307_v60  ;;  %v494_v44 = vld [vmem:[%s792_s7] ss:$0 sm:$0xff] }
  0x91   :  { %v287_v3 = vmul.f32 %v502_v62, %v285_v45  ;;  %v277_v5 = vsel %vm276_vm6, %v500_v46, %v273_v0  ;;  %v316_v6 = vsel %vm313_vm5, %v315_v63, %v311_v4  ;;  %vm292_vm8 = vweird.f32 %v502_v62 }
  0x92   :  { %v282_v8 = vsel %vm279_vm7, %v281_v2, %v277_v5  ;;  %v735_v9 = vmul.f32 %v316_v6, %v301_v61  ;;  %vm293_vm10 = vmor %vm291_vm9, %vm292_vm8 }
  0x93   :  { %v288_v7 = vsub.f32 1.0, %v287_v3  ;;  %v737_v10 = vmul.f32 %v282_v8, %v267_v1 }
  0x95   :  { %v289_v12 = vmul.f32 %v502_v62, %v288_v7  ;;  %v334_v14 = vadd.f32 %v735_v9, %v737_v10 }
  0x97   :  { %v290_v16 = vadd.f32 %v502_v62, %v289_v12  ;;  %503 = vrcp.f32 %v334_v14  ;;  %v346_v27 = vand.u32 2147483648, %v334_v14  ;;  %v344_v29 = vand.u32 2147483647, %v334_v14 }
  0x98   :  { %505 = vrcp.f32 %v623_v24  ;;  %vm340_vm13 = vweird.f32 %v334_v14 }
  0x99   :  { %v294_v18 = vsel %vm293_vm10, %v502_v62, %v290_v16  ;;  %v347_v34 = vor.u32 1.1754944e-38, %v346_v27  ;;  %vm345_vm15 = vcmp.eq.f32.partialorder %v344_v29, 8.507059e+37 }
  0x9a   :  { %v299_v19 = vsel %vm296_vm11, %v298_v17, %v294_v18 }
  0x9b   :  { %v300_v20 = vmul.f32 %v299_v19, %v284_v15 }
  0x9d   :  { %v350_v21 = vadd.f32 %v300_v20, %v737_v10  ;;  %v318_v22 = vadd.f32 %v735_v9, %v300_v20  ;;  %v504_v23 = vpop.eup %503 }
  0x9e   :  { %v336_v25 = vmul.f32 %v504_v23, %v334_v14  ;;  %vm341_vm12 = vweird.f32 %v504_v23  ;;  %v743_v30 = vpop.eup %505 }
  0x9f   :  { %507 = vrcp.f32 %v350_v21  ;;  %vm342_vm14 = vmor %vm340_vm13, %vm341_vm12  ;;  %v161_v39 = vmul.f32 8.0, %v743_v30  ;;  %v362_v42 = vand.u32 2147483648, %v350_v21  ;;  %v360_v46 = vand.u32 2147483647, %v350_v21 }
  0xa0   :  { %509 = vrcp.f32 %v318_v22  ;;  %v337_v26 = vsub.f32 1.0, %v336_v25  ;;  %v330_v47 = vand.u32 2147483648, %v318_v22  ;;  %v328_v52 = vand.u32 2147483647, %v318_v22 }
  0xa1   :  { %v162_v54 = vsub.f32 1.0, %v161_v39  ;;  %vm356_vm2 = vweird.f32 %v350_v21  ;;  %v363_v57 = vor.u32 1.1754944e-38, %v362_v42  ;;  %vm324_vm4 = vweird.f32 %v318_v22 }
  0xa2   :  { %v338_v28 = vmul.f32 %v504_v23, %v337_v26  ;;  %vm361_vm5 = vcmp.eq.f32.partialorder %v360_v46, 8.507059e+37  ;;  %v331_v62 = vor.u32 1.1754944e-38, %v330_v47  ;;  %vm329_vm7 = vcmp.eq.f32.partialorder %v328_v52, 8.507059e+37 }
  0xa3   :  { %v163_v5 = vmul.f32 %v743_v30, %v162_v54  ;;  %vm165_vm8 = vweird.f32 %v743_v30 }
  0xa4   :  { %v339_v32 = vadd.f32 %v504_v23, %v338_v28 }
  0xa5   :  { %v508_v31 = vpop.eup %507  ;;  %v164_v16 = vadd.f32 %v743_v30, %v163_v5 }
  0xa6   :  { %v510_v33 = vpop.eup %509  ;;  %v352_v35 = vmul.f32 %v508_v31, %v350_v21  ;;  %v343_v36 = vsel %vm342_vm14, %v504_v23, %v339_v32  ;;  %vm357_vm0 = vweird.f32 %v508_v31 }
  0xa7   :  { %v320_v37 = vmul.f32 %v510_v33, %v318_v22  ;;  %v348_v38 = vsel %vm345_vm15, %v347_v34, %v343_v36  ;;  %vm325_vm1 = vweird.f32 %v510_v33  ;;  %vm358_vm3 = vmor %vm356_vm2, %vm357_vm0 }
  0xa8   :  { %v353_v40 = vsub.f32 1.0, %v352_v35  ;;  %v349_v41 = vmul.f32 %v348_v38, %v300_v20  ;;  %v111_v48 = vpop.f32.mrf.mxu0  ;;  %vm326_vm6 = vmor %vm324_vm4, %vm325_vm1 }
  0xa9   :  { %v321_v43 = vsub.f32 1.0, %v320_v37  ;;  %v137_v56 = vpop.f32.mrf.mxu1 }
  0xaa   :  { %v354_v45 = vmul.f32 %v508_v31, %v353_v40  ;;  %374 = vperm.xlu2 %492, %v349_v41   ;;  %v114_v49 = vpop.f32.mrf.mxu2  ;;  %v138_v59 = vadd.f32 %v137_v56, %v111_v48 }
  0xab   :  { %v140_v50 = vpop.f32.mrf.mxu3  ;;  %v322_v51 = vmul.f32 %v510_v33, %v321_v43 }
  0xac   :  { %v141_v53 = vadd.f32 %v140_v50, %v114_v49  ;;  %v355_v55 = vadd.f32 %v508_v31, %v354_v45  ;;  %v150_v1 = vadd.f32 %v494_v44, %v138_v59 }
  0xad   :  { %v323_v58 = vadd.f32 %v510_v33, %v322_v51 }
  0xae   :  { %v151_v60 = vadd.f32 %v494_v44, %v141_v53  ;;  %v359_v61 = vsel %vm358_vm3, %v508_v31, %v355_v55  ;;  %v154_v7 = vrot.slane %v150_v1, 4 }
  0xaf   :  { %v364_v63 = vsel %vm361_vm5, %v363_v57, %v359_v61  ;;  %v327_v0 = vsel %vm326_vm6, %v510_v33, %v323_v58 }
  0xb0   :  { %v189_v2 = vrot.slane %v151_v60, 4  ;;  %v365_v3 = vmul.f32 %v364_v63, %v735_v9  ;;  %v332_v4 = vsel %vm329_vm7, %v331_v62, %v327_v0  ;;  %v155_v11 = vadd.f32 %v154_v7, %v150_v1 }
  0xb1   :  { %v333_v6 = vmul.f32 %v332_v4, %v737_v10  ;;  %v166_v10 = vsel %vm165_vm8, %v743_v30, %v164_v16 }
  0xb2   :  { %v190_v8 = vadd.f32 %v189_v2, %v151_v60  ;;  %381 = vperm.xlu2 %492, %v365_v3   ;;  %v117_v12 = vpop.f32.mrf.mxu2  ;;  %v156_v17 = vrot.slane %v155_v11, 2 }
  0xb3   :  { %368 = vperm.xlu1 %491, %v333_v6   ;;  %v143_v13 = vpop.f32.mrf.mxu3 }
  0xb4   :  { %v191_v14 = vrot.slane %v190_v8, 2  ;;  %v144_v15 = vadd.f32 %v143_v13, %v117_v12  ;;  %v157_v19 = vadd.f32 %v156_v17, %v155_v11 }
  0xb6   :  { %v192_v9 = vadd.f32 %v191_v14, %v190_v8  ;;  %v152_v18 = vadd.f32 %v494_v44, %v144_v15  ;;  %v158_v22 = vrot.slane %v157_v19, 1  ;;  %v495_v14 = vld [vmem:[%s793_s8] ss:$0 sm:$0xff]  ;;  %s624_s8 = smov [#allocation6]  }
  0xb8   :  { %v193_v20 = vrot.slane %v192_v9, 1  ;;  %v217_v21 = vrot.slane %v152_v18, 4  ;;  %v159_v25 = vadd.f32 %v158_v22, %v157_v19 }
  0xba   :  { %v194_v23 = vadd.f32 %v193_v20, %v192_v9  ;;  %v218_v24 = vadd.f32 %v217_v21, %v152_v18  ;;  %v167_v28 = vmul.f32 %v166_v10, %v159_v25  ;;  %v496_v9 = vld [vmem:[%s794_s9] ss:$0 sm:$0xff]  ;;  %s417_s9 = sshll.u32 %s624_s8, 4  ;;  %s418_s9 = int_to_ptr.vmem [resolvable:$true] %s417_s9 }
  0xbc   :  { %v195_v26 = vmul.f32 %v194_v23, %v166_v10  ;;  %v219_v27 = vrot.slane %v218_v24, 2  ;;  %v757_v32 = vsub.f32 %v150_v1, %v167_v28 }
  0xbe   :  { %v196_v29 = vsub.f32 %v151_v60, %v195_v26  ;;  %v220_v31 = vadd.f32 %v219_v27, %v218_v24  ;;  %v169_v35 = vmul.f32 %v757_v32, %v757_v32 }
  0xc0   :  { %v197_v33 = vmul.f32 %v196_v29, %v196_v29  ;;  %v221_v34 = vrot.slane %v220_v31, 1  ;;  %v170_v38 = vrot.slane %v169_v35, 4 }
  0xc2   :  { %v198_v36 = vrot.slane %v197_v33, 4  ;;  %v222_v37 = vadd.f32 %v221_v34, %v220_v31  ;;  %v171_v40 = vadd.f32 %v170_v38, %v169_v35 }
  0xc4   :  { %v199_v30 = vadd.f32 %v198_v36, %v197_v33  ;;  %v223_v39 = vmul.f32 %v222_v37, %v166_v10  ;;  %v172_v43 = vrot.slane %v171_v40, 2  ;;  %v390_v33 = vlaneseq }
  0xc6   :  { %v200_v41 = vrot.slane %v199_v30, 2  ;;  %v761_v42 = vsub.f32 %v152_v18, %v223_v39  ;;  %v173_v46 = vadd.f32 %v172_v43, %v171_v40  ;;  %v391_v35 = vand.u32 127, %v390_v33 }
  0xc8   :  { %v201_v44 = vadd.f32 %v200_v41, %v199_v30  ;;  %v225_v45 = vmul.f32 %v761_v42, %v761_v42  ;;  %v174_v49 = vrot.slane %v173_v46, 1  ;;  %vm394_vm2 = vcmp.eq.s32.totalorder %v391_v35, 1 }
  0xc9   :  { %vm392_vm3 = vcmp.eq.s32.totalorder %v391_v35, 0  ;;  %vm397_vm4 = vcmp.eq.s32.totalorder %v391_v35, 2 }
  0xca   :  { %v202_v47 = vrot.slane %v201_v44, 1  ;;  %v226_v48 = vrot.slane %v225_v45, 4  ;;  %v175_v52 = vadd.f32 %v174_v49, %v173_v46 }
  0xcc   :  { %v203_v50 = vadd.f32 %v202_v47, %v201_v44  ;;  %v227_v51 = vadd.f32 %v226_v48, %v225_v45  ;;  %v176_v55 = vmul.f32 %v175_v52, %v166_v10 }
  0xce   :  { %v228_v53 = vrot.slane %v227_v51, 2  ;;  %v204_v54 = vmul.f32 %v203_v50, %v166_v10  ;;  %v177_v58 = vadd.f32 1e-05, %v176_v55 }
  0xd0   :  { %v229_v56 = vadd.f32 %v228_v53, %v227_v51  ;;  %v205_v57 = vadd.f32 1e-05, %v204_v54  ;;  %vm184_vm11 = vweird.f32 %v177_v58 }
  0xd2   :  { %v230_v59 = vrot.slane %v229_v56, 1  ;;  %511 = vrsqrt.f32 %v205_v57  ;;  %vm212_vm9 = vweird.f32 %v205_v57 }
  0xd3   :  { %513 = vrsqrt.f32 %v177_v58 }
  0xd4   :  { %v231_v60 = vadd.f32 %v230_v59, %v229_v56 }
  0xd6   :  { %v232_v61 = vmul.f32 %v231_v60, %v166_v10 }
  0xd8   :  { %v512_v62 = vpop.eup %511  ;;  %v233_v63 = vadd.f32 1e-05, %v232_v61 }
  0xd9   :  { %v514_v0 = vpop.eup %513  ;;  %v207_v1 = vmul.f32 %v512_v62, %v205_v57  ;;  %vm213_vm10 = vweird.f32 %v512_v62 }
  0xda   :  { %515 = vrsqrt.f32 %v233_v63  ;;  %v179_v2 = vmul.f32 %v514_v0, %v177_v58  ;;  %vm185_vm12 = vweird.f32 %v514_v0  ;;  %vm214_vm13 = vmor %vm212_vm9, %vm213_vm10  ;;  %vm240_vm15 = vweird.f32 %v233_v63 }
  0xdb   :  { %v208_v3 = vmul.f32 %v512_v62, %v207_v1  ;;  %vm186_vm14 = vmor %vm184_vm11, %vm185_vm12 }
  0xdc   :  { %v180_v4 = vmul.f32 %v514_v0, %v179_v2 }
  0xdd   :  { %v209_v5 = vmul.f32 0.5, %v208_v3 }
  0xde   :  { %v181_v6 = vmul.f32 0.5, %v180_v4 }
  0xdf   :  { %v210_v7 = vsub.f32 1.5, %v209_v5 }
  0xe0   :  { %v516_v8 = vpop.eup %515  ;;  %v182_v11 = vsub.f32 1.5, %v181_v6 }
  0xe1   :  { %v211_v12 = vmul.f32 %v512_v62, %v210_v7  ;;  %v235_v13 = vmul.f32 %v516_v8, %v233_v63  ;;  %vm241_vm0 = vweird.f32 %v516_v8 }
  0xe2   :  { %v183_v15 = vmul.f32 %v514_v0, %v182_v11  ;;  %vm242_vm1 = vmor %vm240_vm15, %vm241_vm0 }
  0xe3   :  { %v215_v16 = vsel %vm214_vm13, %v512_v62, %v211_v12  ;;  %v236_v17 = vmul.f32 %v516_v8, %v235_v13 }
  0xe4   :  { %v216_v18 = vmul.f32 %v215_v16, %v196_v29  ;;  %v187_v19 = vsel %vm186_vm14, %v514_v0, %v183_v15 }
  0xe5   :  { %v237_v20 = vmul.f32 0.5, %v236_v17  ;;  %v188_v21 = vmul.f32 %v187_v19, %v757_v32 }
  0xe6   :  { %v249_v10 = vmul.f32 %v495_v14, %v216_v18 }
  0xe7   :  { %v238_v22 = vsub.f32 1.5, %v237_v20  ;;  %v248_v23 = vmul.f32 %v495_v14, %v188_v21 }
  0xe8   :  { %v256_v24 = vadd.f32 %v496_v9, %v249_v10 }
  0xe9   :  { %v239_v25 = vmul.f32 %v516_v8, %v238_v22  ;;  %v255_v26 = vadd.f32 %v496_v9, %v248_v23 }
  0xea   :  { %388 = vst [vmem:[#allocation8 + $0x8] sm:$0xff] %v256_v24 }
  0xeb   :  { %v243_v27 = vsel %vm242_vm1, %v516_v8, %v239_v25  ;;  %387 = vst [vmem:[#allocation8] sm:$0xff] %v255_v26 }
  0xec   :  { %v244_v28 = vmul.f32 %v243_v27, %v761_v42 }
  0xee   :  { %v250_v31 = vmul.f32 %v495_v14, %v244_v28 }
  0xf0   :  { %v257_v29 = vadd.f32 %v496_v9, %v250_v31 }
  0xf2   :  { %389 = vst [vmem:[#allocation8 + $0x10] sm:$0xff] %v257_v29 }
 0x104   :  { %v375_v34 = vpop.permute.xlu2 %374 }
 0x105   :  { %v377_v37 = vmul.f32 %v375_v34, %v256_v24  ;;  %v395_v38 = vsel %vm394_vm2, %v375_v34, 0.0 }
 0x10c   :  { %v382_v32 = vpop.permute.xlu2 %381 }
 0x10d   :  { %v384_v41 = vmul.f32 %v382_v32, %v257_v29  ;;  %v398_v42 = vsel %vm397_vm4, %v382_v32, 0.0 }
 0x125   :  { %v369_v36 = vpop.permute.xlu1 %368 }
 0x126   :  { %v371_v30 = vmul.f32 %v369_v36, %v255_v26  ;;  %v393_v39 = vsel %vm392_vm3, %v369_v36, 0.0 }
 0x127   :  { %v396_v40 = vadd.f32 %v395_v38, %v393_v39 }
 0x128   :  { %v378_v43 = vadd.f32 %v377_v37, %v371_v30 }
 0x129   :  { %v399_v44 = vadd.f32 %v398_v42, %v396_v40 }
 0x12a   :  { %v385_v45 = vadd.f32 %v384_v41, %v378_v43 }
 0x12b   :  { %400 = vst [vmem:[#allocation6] sm:$0xff] %v399_v44 }
 0x12c   :  { %386 = vst [vmem:[#allocation5] sm:$0xff] %v385_v45  ;;  %422 = dma.vmem_to_hbm [thread:$0]  %s418_s9, 128, %s420_s22, [#allocation7]  }
 0x12d   :  { %411 = dma.vmem_to_hbm [thread:$0]  %s407_s24, 128, %s409_s29, [#allocation4]  }
 0x12e   :  { %435 = dma.vmem_to_hbm [thread:$0]  %s428_s30, 384, %s430_s0, [#allocation7], %s620_s26, %s620_s26, %s621_s27  }
 0x12f   :  { %615 = dma.done.wait [#allocation4], 128  }
 0x130   :  { %616 = vsyncadd [#allocation4], 4294967168 }
 0x131   :  { %617 = dma.done.wait [#allocation7], 512  }
 0x132   :  { %618 = vsyncadd [#allocation7], 4294966784 }
 0x133   :  { %448 = vsyncpa [#allocation3], 1 }
 0x134   :  { %449 = vsyncpa [#allocation4], 1 }
 0x135   :  { %450 = vsyncpa [#allocation7], 1 }

</bundles_post_ra>
